<compile_context>
chip_gen: v6e
topology: v6e:2x2x1
jax: 0.10.0
libtpu: 0.0.40
codegen_flags: <defaults>
</compile_context>

<pallas_src>
import functools

import jax
import jax.numpy as jnp
from jax import lax
from jax.experimental import pallas as pl
from jax.experimental.pallas import tpu as pltpu

_LANES = 128
_VMEM_LIMIT = 48 * 1024 * 1024   # <= v7x physical VMEM (64 MiB), fine on v5e/v6e
_BN_EPS = 1e-5
_LRELU_SLOPE = 0.2


def _round_up(x, m):
    return ((x + m - 1) // m) * m


def _tiles(m, tile_max=1024):
    """Row-tile size and padded row count (multiples of 16 for bf16 packing)."""
    m16 = _round_up(max(m, 1), 16)
    tm = min(tile_max, m16)
    return tm, _round_up(m16, tm)


def _cols_spec(tm, k, grid):
    """BlockSpec for the (M, K) streaming input; request 3-deep pipelining when
    the grid is long enough to benefit (graceful fallback if unsupported)."""
    index_map = lambda i: (i, 0)
    if grid >= 3:
        try:
            return pl.BlockSpec((tm, k), index_map, pipeline_mode=pl.Buffered(3))
        except Exception:  # older BlockSpec without pipeline_mode / Buffered
            pass
    return pl.BlockSpec((tm, k), index_map)


def _cparams():
    return pltpu.CompilerParams(dimension_semantics=("parallel",),
                                vmem_limit_bytes=_VMEM_LIMIT)


# ---------------------------------------------------------------------------
# Pallas kernels
# ---------------------------------------------------------------------------

def _conv_act_kernel(cols_ref, w_ref, b_ref, o_ref, *, slope):
    """Tiled matmul + bias (+ optional LeakyReLU); narrow bf16 output."""
    y = jnp.dot(cols_ref[...], w_ref[...],
                preferred_element_type=jnp.float32) + b_ref[...]
    if slope is not None:
        y = jnp.where(y > 0, y, slope * y)
    o_ref[...] = y.astype(o_ref.dtype)


def _conv_bn_stats_kernel(cols_ref, w_ref, b_ref, y_ref,
                          sr_ref, ssr_ref, sf_ref, ssf_ref,
                          *, tm, m_valid, m_split):
    """Tiled matmul + bias; stores the pre-BN output (narrow bf16) and emits
    per-tile per-channel sum / sum-of-squares split into two BatchNorm groups
    (rows < m_split vs rows >= m_split), so real/fake halves keep independent
    train-mode statistics even when run in one batched pass."""
    i = pl.program_id(0)
    y = jnp.dot(cols_ref[...], w_ref[...],
                preferred_element_type=jnp.float32) + b_ref[...]
    y_ref[...] = y.astype(y_ref.dtype)

    rows = lax.broadcasted_iota(jnp.int32, y.shape, 0) + i * tm
    valid = rows < m_valid
    in_r = valid & (rows < m_split)
    in_f = valid & (rows >= m_split)
    yr = jnp.where(in_r, y, 0.0)
    yf = jnp.where(in_f, y, 0.0)
    sr_ref[0] = jnp.sum(yr, axis=0, keepdims=True)
    ssr_ref[0] = jnp.sum(yr * yr, axis=0, keepdims=True)
    sf_ref[0] = jnp.sum(yf, axis=0, keepdims=True)
    ssf_ref[0] = jnp.sum(yf * yf, axis=0, keepdims=True)


def _fused_conv_bn_kernel(x_ref, w_ref, b_ref, sc_ref, y_ref, s_ref, ss_ref,
                          *, k, Ho, Wo, slope, in_fold):
    """Fused stride-1 conv over one sample's zero-padded plane (no HBM im2col).
    The previous layer's folded BatchNorm scale + LeakyReLU are applied in VMEM
    to each tap slice; the k*k taps are accumulated with MXU matmuls; the
    pre-BN output plus per-sample BN partial sums are emitted."""
    b = b_ref[...]                                    # (1, Cout) f32
    cout = b.shape[1]
    sc = sc_ref[0]                                    # (1, Cin)  f32
    s_acc = jnp.zeros((1, cout), jnp.float32)
    ss_acc = jnp.zeros((1, cout), jnp.float32)
    for ho in range(Ho):
        acc = jnp.zeros((Wo, cout), jnp.float32)
        for kh in range(k):
            for kw in range(k):
                xs = x_ref[0, ho + kh, kw:kw + Wo, :]         # (Wo, Cin) bf16
                if in_fold:
                    a = xs.astype(jnp.float32) * sc
                    a = jnp.where(a > 0, a, slope * a)
                    xs = a.astype(jnp.bfloat16)
                acc = acc + jnp.dot(xs, w_ref[kh, kw],
                                    preferred_element_type=jnp.float32)
        y_row = acc + b                                       # (Wo, Cout) f32
        y_ref[0, ho] = y_row.astype(y_ref.dtype)
        s_acc = s_acc + jnp.sum(y_row, axis=0, keepdims=True)
        ss_acc = ss_acc + jnp.sum(y_row * y_row, axis=0, keepdims=True)
    s_ref[0] = s_acc
    ss_ref[0] = ss_acc


def _fused_conv_hinge_kernel(x_ref, w_ref, b_ref, sc_ref,
                             g_ref, r1m_ref, r1p_ref,
                             *, k, Ho, Wo, slope, in_fold):
    """Final (Cout=1) stride-1 conv with the hinge reductions fused in: emits
    per-sample sum(logits), sum(relu(1-logits)), sum(relu(1+logits)).  The
    (N,1,H',W') logits never touch HBM."""
    b = b_ref[...]                                    # (1, 1)
    sc = sc_ref[0]                                    # (1, Cin)
    g = jnp.zeros((1, 1), jnp.float32)
    r1m = jnp.zeros((1, 1), jnp.float32)
    r1p = jnp.zeros((1, 1), jnp.float32)
    for ho in range(Ho):
        acc = jnp.zeros((Wo, 1), jnp.float32)
        for kh in range(k):
            for kw in range(k):
                xs = x_ref[0, ho + kh, kw:kw + Wo, :]
                if in_fold:
                    a = xs.astype(jnp.float32) * sc
                    a = jnp.where(a > 0, a, slope * a)
                    xs = a.astype(jnp.bfloat16)
                acc = acc + jnp.dot(xs, w_ref[kh, kw],
                                    preferred_element_type=jnp.float32)
        logit = acc + b                                       # (Wo, 1)
        g = g + jnp.sum(logit, axis=0, keepdims=True)
        r1m = r1m + jnp.sum(jnp.maximum(1.0 - logit, 0.0), axis=0, keepdims=True)
        r1p = r1p + jnp.sum(jnp.maximum(1.0 + logit, 0.0), axis=0, keepdims=True)
    g_ref[0] = g
    r1m_ref[0] = r1m
    r1p_ref[0] = r1p


def _sq_diff_partial_kernel(a_ref, b_ref, o_ref):
    """Per-tile partial sum of squared differences (lane-wise)."""
    d = a_ref[...] - b_ref[...]
    o_ref[0] = jnp.sum(d * d, axis=0, keepdims=True)


# ---------------------------------------------------------------------------
# pallas_call wrappers
# ---------------------------------------------------------------------------

def conv_act(cols, w2, b2, slope, tile_max=1024):
    m, k = cols.shape
    c = w2.shape[1]
    tm, mp = _tiles(m, tile_max)
    if mp != m:
        cols = jnp.pad(cols, ((0, mp - m), (0, 0)))
    grid = mp // tm
    y = pl.pallas_call(
        functools.partial(_conv_act_kernel, slope=slope),
        out_shape=jax.ShapeDtypeStruct((mp, c), jnp.bfloat16),
        grid=(grid,),
        in_specs=[_cols_spec(tm, k, grid),
                  pl.BlockSpec((k, c), lambda i: (0, 0)),
                  pl.BlockSpec((1, c), lambda i: (0, 0))],
        out_specs=pl.BlockSpec((tm, c), lambda i: (i, 0)),
        compiler_params=_cparams(),
    )(cols, w2, b2)
    return y[:m] if mp != m else y


def conv_bn_stats(cols, w2, b2, m_split, tile_max=1024):
    m, k = cols.shape
    c = w2.shape[1]
    tm, mp = _tiles(m, tile_max)
    if mp != m:
        cols = jnp.pad(cols, ((0, mp - m), (0, 0)))
    grid = mp // tm
    y, s_r, ss_r, s_f, ss_f = pl.pallas_call(
        functools.partial(_conv_bn_stats_kernel, tm=tm, m_valid=m, m_split=m_split),
        out_shape=(jax.ShapeDtypeStruct((mp, c), jnp.bfloat16),)
                  + (jax.ShapeDtypeStruct((grid, 1, c), jnp.float32),) * 4,
        grid=(grid,),
        in_specs=[_cols_spec(tm, k, grid),
                  pl.BlockSpec((k, c), lambda i: (0, 0)),
                  pl.BlockSpec((1, c), lambda i: (0, 0))],
        out_specs=(pl.BlockSpec((tm, c), lambda i: (i, 0)),)
                  + (pl.BlockSpec((1, 1, c), lambda i: (i, 0, 0)),) * 4,
        compiler_params=_cparams(),
    )(cols, w2, b2)
    if mp != m:
        y = y[:m]
    return y, s_r, ss_r, s_f, ss_f


def fused_conv_bn_stats(x_pad, w4, b2, scale_ps, ho, wo):
    n, hp, wp, cin = x_pad.shape
    k = w4.shape[0]
    cout = w4.shape[-1]
    in_fold = scale_ps is not None
    sc = scale_ps if in_fold else jnp.ones((n, 1, cin), jnp.float32)
    return pl.pallas_call(
        functools.partial(_fused_conv_bn_kernel, k=k, Ho=ho, Wo=wo,
                          slope=_LRELU_SLOPE, in_fold=in_fold),
        out_shape=(jax.ShapeDtypeStruct((n, ho, wo, cout), jnp.bfloat16),
                   jax.ShapeDtypeStruct((n, 1, cout), jnp.float32),
                   jax.ShapeDtypeStruct((n, 1, cout), jnp.float32)),
        grid=(n,),
        in_specs=[pl.BlockSpec((1, hp, wp, cin), lambda i: (i, 0, 0, 0)),
                  pl.BlockSpec((k, k, cin, cout), lambda i: (0, 0, 0, 0)),
                  pl.BlockSpec((1, cout), lambda i: (0, 0)),
                  pl.BlockSpec((1, 1, cin), lambda i: (i, 0, 0))],
        out_specs=(pl.BlockSpec((1, ho, wo, cout), lambda i: (i, 0, 0, 0)),
                   pl.BlockSpec((1, 1, cout), lambda i: (i, 0, 0)),
                   pl.BlockSpec((1, 1, cout), lambda i: (i, 0, 0))),
        compiler_params=_cparams(),
    )(x_pad, w4, b2, sc)


def fused_conv_hinge(x_pad, w4, b2, scale_ps, ho, wo):
    n, hp, wp, cin = x_pad.shape
    k = w4.shape[0]
    in_fold = scale_ps is not None
    sc = scale_ps if in_fold else jnp.ones((n, 1, cin), jnp.float32)
    return pl.pallas_call(
        functools.partial(_fused_conv_hinge_kernel, k=k, Ho=ho, Wo=wo,
                          slope=_LRELU_SLOPE, in_fold=in_fold),
        out_shape=(jax.ShapeDtypeStruct((n, 1, 1), jnp.float32),) * 3,
        grid=(n,),
        in_specs=[pl.BlockSpec((1, hp, wp, cin), lambda i: (i, 0, 0, 0)),
                  pl.BlockSpec((k, k, cin, 1), lambda i: (0, 0, 0, 0)),
                  pl.BlockSpec((1, 1), lambda i: (0, 0)),
                  pl.BlockSpec((1, 1, cin), lambda i: (i, 0, 0))],
        out_specs=(pl.BlockSpec((1, 1, 1), lambda i: (i, 0, 0)),) * 3,
        compiler_params=_cparams(),
    )(x_pad, w4, b2, sc)


def squared_diff_sum(a, b, tile_rows=2048):
    n = a.size
    rows = pl.cdiv(n, _LANES)
    tr, rows_p = _tiles(rows, tile_rows)
    npad = rows_p * _LANES
    a2 = a.reshape(-1).astype(jnp.float32)
    b2 = b.reshape(-1).astype(jnp.float32)
    if npad != n:
        a2 = jnp.pad(a2, (0, npad - n))
        b2 = jnp.pad(b2, (0, npad - n))
    a2 = a2.reshape(rows_p, _LANES)
    b2 = b2.reshape(rows_p, _LANES)
    grid = rows_p // tr
    out = pl.pallas_call(
        _sq_diff_partial_kernel,
        out_shape=jax.ShapeDtypeStruct((grid, 1, _LANES), jnp.float32),
        grid=(grid,),
        in_specs=[_cols_spec(tr, _LANES, grid),
                  _cols_spec(tr, _LANES, grid)],
        out_specs=pl.BlockSpec((1, 1, _LANES), lambda i: (i, 0, 0)),
        compiler_params=_cparams(),
    )(a2, b2)
    return jnp.sum(out)


# ---------------------------------------------------------------------------
# Discriminator (PatchGAN) parameters and forward pipeline
# ---------------------------------------------------------------------------

def init_patchgan_params(key, input_nc=3, ndf=8, n_layers=2):
    """PatchGAN (pix2pix NLayerDiscriminator) params, 4x4 kernels, N(0, 0.02)."""
    def conv_param(k, cin, cout):
        w = 0.02 * jax.random.normal(k, (cout, cin, 4, 4), jnp.float32)
        b = jnp.zeros((cout,), jnp.float32)
        return w, b

    keys = jax.random.split(key, n_layers + 2)
    layers = []
    w, b = conv_param(keys[0], input_nc, ndf)
    layers.append(dict(w=w, b=b, stride=2, bn=False, act=True))
    nf_mult = 1
    for n in range(1, n_layers):
        nf_prev, nf_mult = nf_mult, min(2 ** n, 8)
        w, b = conv_param(keys[n], ndf * nf_prev, ndf * nf_mult)
        layers.append(dict(w=w, b=b, stride=2, bn=True, act=True))
    nf_prev, nf_mult = nf_mult, min(2 ** n_layers, 8)
    w, b = conv_param(keys[n_layers], ndf * nf_prev, ndf * nf_mult)
    layers.append(dict(w=w, b=b, stride=1, bn=True, act=True))
    w, b = conv_param(keys[n_layers + 1], ndf * nf_mult, 1)
    layers.append(dict(w=w, b=b, stride=1, bn=False, act=False))
    return layers


def _prep_layer(w, b, stride, bn, act):
    """PyTorch (Cout,Cin,kh,kw) weights -> bf16 (kh,kw,Cin,Cout) for the fused
    stride-1 kernels and flattened (kh*kw*Cin, Cout) for the im2col matmuls.
    No lane padding: the real K / Cout are legal full-array block dims."""
    cout, cin, kh, kw = w.shape
    w4 = jnp.transpose(w, (2, 3, 1, 0)).astype(jnp.bfloat16)
    w2 = w4.reshape(kh * kw * cin, cout)
    b2 = b.reshape(1, cout).astype(jnp.float32)
    return dict(w2=w2, w4=w4, b2=b2, k=kh, stride=stride, bn=bn, act=act,
                cout=cout, cin=cin)


def _im2col_nhwc(x, k, stride, pad):
    """x: (N, H, W, C) bf16 -> patches (N*Ho*Wo, k*k*C) bf16, (kh, kw, c) order."""
    n, h, w, c = x.shape
    xp = jnp.pad(x, ((0, 0), (pad, pad), (pad, pad), (0, 0)))
    ho = (h + 2 * pad - k) // stride + 1
    wo = (w + 2 * pad - k) // stride + 1
    pats = []
    for i in range(k):
        for j in range(k):
            pats.append(xp[:, i:i + stride * ho:stride, j:j + stride * wo:stride, :])
    cols = jnp.stack(pats, axis=3).reshape(n * ho * wo, k * k * c)
    return cols, ho, wo


def _per_group_bn_fold(s_r, ss_r, cnt_r, s_f, ss_f, cnt_f, n, split_n):
    """Per-sample (N, C) BatchNorm mean / rsqrt(var+eps), computed independently
    for samples [0, split_n) and [split_n, N) (real/fake halves)."""
    def fold(s, ss, cnt):
        c = float(max(cnt, 1))
        mean = s / c
        var = jnp.maximum(ss / c - mean * mean, 0.0)   # guard f32 cancellation
        return mean, lax.rsqrt(var + _BN_EPS)

    m_r, sc_r = fold(s_r, ss_r, cnt_r)
    m_f, sc_f = fold(s_f, ss_f, cnt_f)
    in_r = (jnp.arange(n) < split_n)[:, None]
    mean_ps = jnp.where(in_r, m_r, m_f)                 # (N, C)
    scale_ps = jnp.where(in_r, sc_r, sc_f)              # (N, C)
    return mean_ps, scale_ps


def _disc_hinge_partials(x_nchw, layers, split_n):
    """Run the PatchGAN discriminator (train-mode BatchNorm) over a batch whose
    samples [0, split_n) and [split_n, N) form independent BatchNorm groups.
    Returns per-sample hinge partial sums over the logits and the number of
    logits per sample."""
    x = jnp.transpose(x_nchw, (0, 2, 3, 1)).astype(jnp.bfloat16)   # NHWC bf16
    n = x.shape[0]
    pend = None          # (mean_ps, scale_ps) pending BN fold on pre-BN x
    n_layers = len(layers)

    for li, lp in enumerate(layers):
        k, stride = lp['k'], lp['stride']
        last = li == n_layers - 1
        h, w = x.shape[1], x.shape[2]
        ho = (h + 2 - k) // stride + 1
        wo = (w + 2 - k) // stride + 1

        if stride == 1:
            # Fused shifted-matmul conv; the pending BN scale + LeakyReLU is
            # applied to the tap slices in VMEM.  Only the mean subtraction
            # happens in XLA (fused with the zero-pad) so padded positions stay
            # exactly zero after the fold.
            if pend is not None:
                mean_ps, scale_ps = pend
                xin = (x.astype(jnp.float32) - mean_ps[:, None, None, :]
                       ).astype(jnp.bfloat16)
                sc = scale_ps[:, None, :]
            else:
                xin, sc = x, None
            xin = jnp.pad(xin, ((0, 0), (1, 1), (1, 1), (0, 0)))
            if last:
                g, r1m, r1p = fused_conv_hinge(xin, lp['w4'], lp['b2'], sc, ho, wo)
                return (g.reshape(n), r1m.reshape(n), r1p.reshape(n)), ho * wo
            assert lp['bn'] and lp['act'], \
                "intermediate stride-1 PatchGAN layers use BatchNorm + LeakyReLU"
            y, s, ss = fused_conv_bn_stats(xin, lp['w4'], lp['b2'], sc, ho, wo)
            in_r = (jnp.arange(n) < split_n)[:, None]
            s_r = jnp.sum(jnp.where(in_r, s[:, 0, :], 0.0), axis=0, keepdims=True)
            ss_r = jnp.sum(jnp.where(in_r, ss[:, 0, :], 0.0), axis=0, keepdims=True)
            s_f = jnp.sum(jnp.where(in_r, 0.0, s[:, 0, :]), axis=0, keepdims=True)
            ss_f = jnp.sum(jnp.where(in_r, 0.0, ss[:, 0, :]), axis=0, keepdims=True)
            pend = _per_group_bn_fold(s_r, ss_r, split_n * ho * wo,
                                      s_f, ss_f, (n - split_n) * ho * wo,
                                      n, split_n)
            x = y
        else:
            # Stride-2 layers: lane-dense im2col matmul (cols built directly in
            # bf16 from bf16 activations; real K, no lane pad).
            if pend is not None:
                mean_ps, scale_ps = pend
                xf = (x.astype(jnp.float32) - mean_ps[:, None, None, :]) \
                     * scale_ps[:, None, None, :]
                x = jnp.where(xf > 0, xf, _LRELU_SLOPE * xf).astype(jnp.bfloat16)
                pend = None
            cols, _, _ = _im2col_nhwc(x, k, stride, 1)
            m = cols.shape[0]
            if lp['bn']:
                m_split = split_n * ho * wo
                y, s_r, ss_r, s_f, ss_f = conv_bn_stats(cols, lp['w2'], lp['b2'],
                                                        m_split)
                pend = _per_group_bn_fold(
                    jnp.sum(s_r, axis=0), jnp.sum(ss_r, axis=0), m_split,
                    jnp.sum(s_f, axis=0), jnp.sum(ss_f, axis=0), m - m_split,
                    n, split_n)
                x = y.reshape(n, ho, wo, lp['cout'])
            else:
                slope = _LRELU_SLOPE if lp['act'] else None
                y = conv_act(cols, lp['w2'], lp['b2'], slope)
                x = y.reshape(n, ho, wo, lp['cout'])
                pend = None

    raise AssertionError("PatchGAN discriminator must end with a stride-1 logits layer")


# ---------------------------------------------------------------------------
# VQLoss
# ---------------------------------------------------------------------------

def adopt_weight(weight, global_step, threshold=0, value=0.0):
    # trace-safe version of the PyTorch helper
    return jnp.where(jnp.asarray(global_step) < threshold, value, weight)


class VQLossPallas:
    """Forward-only VQLoss (defaults: hinge disc/gen loss, L2 rec, PatchGAN)."""

    def __init__(self, disc_start, disc_dim=8, disc_num_layers=2,
                 disc_in_channels=3, disc_weight=1.0, reconstruction_weight=1.0,
                 perceptual_weight=1.0, codebook_weight=1.0, seed=0):
        self.discriminator_iter_start = disc_start
        self.disc_weight = disc_weight
        self.rec_weight = reconstruction_weight
        self.perceptual_weight = perceptual_weight
        self.codebook_weight = codebook_weight
        self.disc_params = init_patchgan_params(
            jax.random.PRNGKey(seed), disc_in_channels, disc_dim, disc_num_layers)
        self.prep_params = [_prep_layer(l['w'], l['b'], l['stride'], l['bn'], l['act'])
                            for l in self.disc_params]
        assert self.prep_params[-1]['stride'] == 1

    def __call__(self, inputs, reconstructions, optimizer_idx, global_step):
        disc_weight = adopt_weight(self.disc_weight, global_step,
                                   threshold=self.discriminator_iter_start)
        if optimizer_idx == 0:
            rec_loss = squared_diff_sum(inputs, reconstructions) / float(inputs.size)
            p_loss = 0.0   # TODO(synk): LPIPS omitted (needs pretrained VGG)
            n = reconstructions.shape[0]
            (g, _, _), n_per = _disc_hinge_partials(reconstructions,
                                                    self.prep_params, split_n=n)
            gen_adv = -jnp.sum(g) / float(n * n_per)
            disc_adaptive_weight = 1.0   # disc_adaptive_weight=False path
            return (self.rec_weight * rec_loss + self.perceptual_weight * p_loss
                    + disc_adaptive_weight * disc_weight * gen_adv)
        if optimizer_idx == 1:
            # One batched discriminator pass over [real; fake]; BatchNorm stats
            # are kept separate per half, so this matches two independent calls.
            nr = inputs.shape[0]
            both = jnp.concatenate([lax.stop_gradient(inputs),
                                    lax.stop_gradient(reconstructions)], axis=0)
            (_, r1m, r1p), n_per = _disc_hinge_partials(both, self.prep_params,
                                                        split_n=nr)
            nf = both.shape[0] - nr
            loss_real = jnp.sum(r1m[:nr]) / float(nr * n_per)
            loss_fake = jnp.sum(r1p[nr:]) / float(nf * n_per)
            return disc_weight * 0.5 * (loss_real + loss_fake)
        raise ValueError("optimizer_idx must be 0 or 1")


# ---------------------------------------------------------------------------
# Pure-JAX reference (mirrors the bf16-operand / f32-accumulate numerics)
# ---------------------------------------------------------------------------

def _ref_disc_logits(x, layers):
    x = x.astype(jnp.float32)
    for layer in layers:
        s = layer['stride']
        y = lax.conv_general_dilated(
            x.astype(jnp.bfloat16), layer['w'].astype(jnp.bfloat16), (s, s),
            [(1, 1), (1, 1)], dimension_numbers=('NCHW', 'OIHW', 'NCHW'),
            preferred_element_type=jnp.float32)
        y = y + layer['b'][None, :, None, None]
        if layer['bn']:
            mean = y.mean(axis=(0, 2, 3), keepdims=True)
            var = jnp.maximum((y * y).mean(axis=(0, 2, 3), keepdims=True)
                              - mean * mean, 0.0)
            scale = lax.rsqrt(var + _BN_EPS)
            # mirror the kernel path: pre-BN activation round-trips HBM as bf16,
            # and the mean-centered value re-enters the next kernel as bf16.
            y = y.astype(jnp.bfloat16).astype(jnp.float32)
            y = (y - mean).astype(jnp.bfloat16).astype(jnp.float32) * scale
        if layer['act']:
            y = jnp.where(y > 0, y, _LRELU_SLOPE * y)
        x = y
    return x


def _ref_gen_loss(inputs, recon, layers, rec_w, g_w):
    rec_loss = jnp.mean((inputs - recon) ** 2)
    logits_fake = _ref_disc_logits(recon, layers)
    return rec_w * rec_loss + g_w * (-jnp.mean(logits_fake))


def _ref_d_loss(inputs, recon, layers, disc_w):
    lr = _ref_disc_logits(inputs, layers)
    lf = _ref_disc_logits(recon, layers)
    return disc_w * 0.5 * (jnp.mean(jnp.maximum(1.0 - lr, 0.0)) +
                           jnp.mean(jnp.maximum(1.0 + lf, 0.0)))


if __name__ == "__main__":
    key = jax.random.PRNGKey(0)
    k1, k2 = jax.random.split(key)
    inputs = jax.random.normal(k1, (2, 3, 16, 16), jnp.float32)
    reconstructions = jax.random.normal(k2, (2, 3, 16, 16), jnp.float32)

    vq = VQLossPallas(disc_start=0, disc_dim=8, disc_num_layers=2,
                      disc_in_channels=3, seed=0)

    g_loss = vq(inputs, reconstructions, optimizer_idx=0, global_step=1)
    d_loss = vq(inputs, reconstructions, optimizer_idx=1, global_step=1)
    jax.block_until_ready((g_loss, d_loss))

    g_ref = _ref_gen_loss(inputs, reconstructions, vq.disc_params, 1.0, 1.0)
    d_ref = _ref_d_loss(inputs, reconstructions, vq.disc_params, 1.0)
    assert jnp.allclose(g_loss, g_ref, rtol=5e-3, atol=5e-3), (g_loss, g_ref)
    assert jnp.allclose(d_loss, d_ref, rtol=5e-3, atol=5e-3), (d_loss, d_ref)

    print("KERNEL_OK")
</pallas_src>

<mosaic_0001>
module attributes {stable_mosaic.version = 11 : i64} {
  func.func @_sq_diff_partial_kernel(%arg0: i32, %arg1: memref<16x128xf32, #tpu.memory_space<vmem>>, %arg2: memref<16x128xf32, #tpu.memory_space<vmem>>, %arg3: memref<1x1x128xf32, #tpu.memory_space<vmem>>) attributes {dimension_semantics = [#tpu.dimension_semantics<parallel>], iteration_bounds = array<i64: 1>, scalar_prefetch = 0 : i64, scratch_operands = 0 : i64, tpu.core_type = #tpu.core_type<tc>, window_params = [{transform_indices = @transform_0, window_bounds = array<i64: 16, 128>}, {transform_indices = @transform_1, window_bounds = array<i64: 16, 128>}, {transform_indices = @transform_2, window_bounds = array<i64: 1, 1, 128>}]} {
    %c0 = arith.constant 0 : index
    %c0_0 = arith.constant 0 : index
    %0 = vector.load %arg1[%c0, %c0_0] : memref<16x128xf32, #tpu.memory_space<vmem>>, vector<16x128xf32>
    %c0_1 = arith.constant 0 : index
    %c0_2 = arith.constant 0 : index
    %1 = vector.load %arg2[%c0_1, %c0_2] : memref<16x128xf32, #tpu.memory_space<vmem>>, vector<16x128xf32>
    %2 = arith.subf %0, %1 : vector<16x128xf32>
    %3 = arith.mulf %2, %2 : vector<16x128xf32>
    %cst = arith.constant dense<0.000000e+00> : vector<128xf32>
    %4 = vector.multi_reduction <add>, %3, %cst [0] : vector<16x128xf32> to vector<128xf32>
    %5 = vector.shape_cast %4 : vector<128xf32> to vector<1x128xf32>
    %c0_3 = arith.constant 0 : index
    %c0_4 = arith.constant 0 : index
    %c0_5 = arith.constant 0 : index
    %6 = vector.load %arg3[%c0_3, %c0_4, %c0_5] : memref<1x1x128xf32, #tpu.memory_space<vmem>>, vector<1x1x128xf32>
    %7 = vector.shape_cast %6 : vector<1x1x128xf32> to vector<1x128xf32>
    %8 = vector.shape_cast %5 : vector<1x128xf32> to vector<1x1x128xf32>
    tpu.vector_store %arg3[%c0_3, %c0_4, %c0_5], %8 {strides = array<i32>} : memref<1x1x128xf32, #tpu.memory_space<vmem>>, vector<1x1x128xf32>,
    return
  }
  func.func @transform_0(%arg0: i32) -> (i32, i32) {
    %c0_i32 = arith.constant 0 : i32
    %c0_i32_0 = arith.constant 0 : i32
    return %arg0, %c0_i32 : i32, i32
  }
  func.func @transform_1(%arg0: i32) -> (i32, i32) {
    %c0_i32 = arith.constant 0 : i32
    %c0_i32_0 = arith.constant 0 : i32
    return %arg0, %c0_i32 : i32, i32
  }
  func.func @transform_2(%arg0: i32) -> (i32, i32, i32) {
    %c0_i32 = arith.constant 0 : i32
    %c0_i32_0 = arith.constant 0 : i32
    %c0_i32_1 = arith.constant 0 : i32
    return %arg0, %c0_i32, %c0_i32_0 : i32, i32, i32
  }
}

</mosaic_0001>

<bundles_post_ra>
// kernel: tpu_custom_call.1
= control target key start
LH: loop header
LB: loop body
LE: loop exit
PB: predicated region body
PF: predicated region fallthrough
CT: control target
= control target key end

     0   :  { %7 = vsyncpa [#allocation3], 0  ;;  %s172_s0 = inlined_call_operand.hbm [shape: f32[16,128], index: 0, kind: input, shape index: {}]   ;;  %s173_s1 = inlined_call_operand.hbm [shape: f32[16,128], index: 1, kind: input, shape index: {}]   ;;  %s174_s2 = inlined_call_operand.hbm [shape: f32[1,1,128], index: 2, kind: output, shape index: {}]  }
   0x1   :  { %8 = vsyncpa [#allocation6], 0 }
   0x2   :  { %9 = vsyncpa [#allocation4], 0  ;;  %s143_s9 = smov [#allocation2]  }
   0x3   :  { %s15_s10 = sshll.u32 %s143_s9, 4  ;;  %s16_s10 = int_to_ptr.vmem [resolvable:$true] %s15_s10 }
   0x4   :  { %s85_s11 = scalar_lea.vmem %s16_s10, 256  ;;  %p90_p1 = scmp.lt.s32.totalorder %s16_s10, %s16_s10 }
   0x5   :  { %p86_p0 = scmp.ne.s32.totalorder %s16_s10, %s85_s11  ;;  %p91_p2 = scmp.lt.s32.totalorder %s85_s11, %s85_s11 }
   0x7   :  { %p92_p3 = por %p91_p2, %p90_p1 }
   0x9   :  { %p93_p4 = pnand %p92_p3, %p86_p0 }
   0xb   :  { %96 = shalt.err (!%p93_p4)
}
   0xc   :  { %s144_s12 = smov 128   ;;  %s145_s13 = smov 8  }
   0xd   :  { %21 = dma.hbm_to_vmem [thread:$0]  %s172_s0, 256, %s16_s10, [#allocation3], %s144_s12, %s144_s12, %s145_s13  }
   0xe   :  { %s146_s16 = smov [#allocation5]  }
   0xf   :  { %s27_s17 = sshll.u32 %s146_s16, 4  ;;  %s28_s17 = int_to_ptr.vmem [resolvable:$true] %s27_s17 }
  0x10   :  { %s105_s18 = scalar_lea.vmem %s28_s17, 256  ;;  %p110_p6 = scmp.lt.s32.totalorder %s28_s17, %s28_s17 }
  0x11   :  { %p106_p5 = scmp.ne.s32.totalorder %s28_s17, %s105_s18  ;;  %p111_p7 = scmp.lt.s32.totalorder %s105_s18, %s105_s18 }
  0x13   :  { %p112_p8 = por %p111_p7, %p110_p6 }
  0x15   :  { %p113_p9 = pnand %p112_p8, %p106_p5 }
  0x17   :  { %116 = shalt.err (!%p113_p9)
}
  0x18   :  { %33 = dma.hbm_to_vmem [thread:$0]  %s173_s1, 256, %s28_s17, [#allocation6], %s144_s12, %s144_s12, %s145_s13  }
  0x19   :  { %137 = dma.done.wait [#allocation3], 256  }
  0x1a   :  { %138 = vsyncadd [#allocation3], 4294967040 }
  0x1b   :  { %139 = dma.done.wait [#allocation6], 256  }
  0x1c   :  { %140 = vsyncadd [#allocation6], 4294967040  ;;  %v40_v0 = vld [vmem:[#allocation2] sm:$0xff]  ;;  %v41_v1 = vld [vmem:[#allocation2 + $0x8] sm:$0xff]  ;;  %s147_s0 = smov [#allocation7]  }
  0x1d   :  { %v42_v2 = vld [vmem:[#allocation5] sm:$0xff]  ;;  %v43_v3 = vld [vmem:[#allocation5 + $0x8] sm:$0xff]  ;;  %s62_s21 = sshll.u32 %s147_s0, 4  ;;  %s63_s21 = int_to_ptr.vmem [resolvable:$true] %s62_s21 }
  0x1e   :  { %v44_v4 = vsub.f32 %v40_v0, %v42_v2  ;;  %v45_v5 = vsub.f32 %v41_v1, %v43_v3  ;;  %s117_s1 = scalar_lea.vmem %s63_s21, 16  ;;  %s121_s22 = scalar_lea.vmem %s63_s21, 32 }
  0x1f   :  { %p118_p10 = scmp.ne.s32.totalorder %s63_s21, %s117_s1  ;;  %p122_p11 = scmp.lt.s32.totalorder %s63_s21, %s63_s21 }
  0x20   :  { %v46_v6 = vmul.f32 %v44_v4, %v44_v4  ;;  %v47_v7 = vmul.f32 %v45_v5, %v45_v5  ;;  %p123_p12 = scmp.lt.s32.totalorder %s121_s22, %s117_s1 }
  0x22   :  { %v48_v8 = vadd.f32 %v47_v7, %v46_v6  ;;  %p124_p13 = por %p123_p12, %p122_p11 }
  0x24   :  { %v49_v9 = vrot.slane %v48_v8, 4  ;;  %p125_p0 = pnand %p124_p13, %p118_p10 }
  0x26   :  { %v50_v10 = vadd.f32 %v49_v9, %v48_v8 }
  0x28   :  { %v51_v11 = vrot.slane %v50_v10, 2 }
  0x2a   :  { %v52_v12 = vadd.f32 %v51_v11, %v50_v10 }
  0x2c   :  { %v53_v13 = vrot.slane %v52_v12, 1 }
  0x2e   :  { %v54_v14 = vadd.f32 %v53_v13, %v52_v12 }
  0x30   :  { %55 = vst [vmem:[#allocation7] sm:$0x1] %v54_v14 }
  0x31   :  { %128 = shalt.err (!%p125_p0)
}
  0x32   :  { %65 = dma.vmem_to_hbm [thread:$0]  %s63_s21, 16, %s174_s2, [#allocation4]  }
  0x33   :  { %141 = dma.done.wait [#allocation4], 16  }
  0x34   :  { %142 = vsyncadd [#allocation4], 4294967280 }
  0x35   :  { %69 = vsyncpa [#allocation3], 1 }
  0x36   :  { %70 = vsyncpa [#allocation6], 1 }
  0x37   :  { %71 = vsyncpa [#allocation4], 1 }

</bundles_post_ra>
